<compile_context>
chip_gen: v7x
topology: tpu7x:2x2x1
jax: 0.10.0
libtpu: 0.0.40
codegen_flags: <defaults>
</compile_context>

<pallas_src>
import functools

import jax
import jax.numpy as jnp
from jax import lax
from jax.experimental import pallas as pl
from jax.experimental.pallas import tpu as pltpu

K_TOP = 2  # config.k


def _pooler_kernel(x_ref, w_ref, b_ref, o_ref, *, k):
    # x_ref: [TB, S, H]  block of batch rows
    # w_ref: [H, H]      nn.Linear weight (row = output feature), NOT transposed
    # b_ref: [1, H]
    # o_ref: [TB, H]
    TB, S, H = x_ref.shape

    # Streaming top-k over the sequence axis: keep a per-lane sorted list
    # tops[0] >= tops[1] >= ... >= tops[k-1] and bubble-insert each row.
    # This matches torch.topk value semantics (duplicated maxima are counted
    # as many times as they appear).  Pure VPU max/min, one pass over the tile.
    neg_inf = jnp.full((TB, H), -jnp.inf, dtype=x_ref.dtype)
    tops = [neg_inf] * k
    for s in range(S):                       # static unroll (S known at trace time)
        cur = x_ref[:, s, :]                 # [TB, H]
        new_tops = []
        for i in range(k):
            t = tops[i]
            new_tops.append(jnp.maximum(t, cur))
            cur = jnp.minimum(t, cur)        # carry the displaced value down
        tops = new_tops

    # Only the tiny pooled accumulator is promoted to f32.
    acc = tops[0].astype(jnp.float32)
    for i in range(1, k):
        acc = acc + tops[i].astype(jnp.float32)
    pooled = (acc * (1.0 / k)).astype(w_ref.dtype)          # [TB, H]

    # pooled @ W.T : contract dim 1 of pooled with dim 1 of W (no transpose).
    y = lax.dot_general(pooled, w_ref[...],
                        dimension_numbers=(((1,), (1,)), ((), ())),
                        preferred_element_type=jnp.float32)  # [TB, H] f32 acc
    y = y + b_ref[...].astype(jnp.float32)
    o_ref[...] = jnp.tanh(y).astype(o_ref.dtype)


def my_bert_pooler(hidden_states, weight, bias, *, k=K_TOP, tb=8):
    """hidden_states: [B, S, H], weight: [H, H] (nn.Linear layout), bias: [H]."""
    B, S, H = hidden_states.shape
    assert S >= k, "need at least k sequence positions for top-k"

    # Batch tile size: >= 8 when possible (f32 sublane quantum); pad B to a
    # multiple of TB (padded rows compute garbage that is sliced off).
    tb = max(1, min(tb, B))
    pad = (-B) % tb
    if pad:
        hidden_states = jnp.pad(hidden_states, ((0, pad), (0, 0), (0, 0)))
    Bp = B + pad

    b2 = bias.reshape(1, H)
    kernel = functools.partial(_pooler_kernel, k=k)

    # NOTE: for production shapes (e.g. bf16, S=512, H=1024) size TB against
    # VMEM: ~2*TB*S*H*bytes (double-buffered x) + H*H*bytes (resident W) and
    # raise vmem_limit_bytes accordingly; keep TB <= B/2 so the parallel batch
    # axis can be split across both v7x TensorCores.
    out = pl.pallas_call(
        kernel,
        out_shape=jax.ShapeDtypeStruct((Bp, H), hidden_states.dtype),
        grid_spec=pltpu.PrefetchScalarGridSpec(
            num_scalar_prefetch=0,
            grid=(Bp // tb,),
            in_specs=[
                pl.BlockSpec((tb, S, H), lambda b: (b, 0, 0)),   # batch tile of x
                pl.BlockSpec((H, H), lambda b: (0, 0)),          # weight, VMEM-resident
                pl.BlockSpec((1, H), lambda b: (0, 0)),          # bias,   VMEM-resident
            ],
            out_specs=pl.BlockSpec((tb, H), lambda b: (b, 0)),
        ),
        compiler_params=pltpu.CompilerParams(
            dimension_semantics=("parallel",)),
    )(hidden_states, weight, b2)

    return out[:B] if pad else out


def _reference(hidden_states, weight, bias, *, k=K_TOP):
    # pure-JAX reference: top_k over seq axis -> mean of k -> linear -> tanh
    topk_vals, _ = jax.lax.top_k(jnp.swapaxes(hidden_states, 1, 2), k)  # [B, H, k]
    pooled = jnp.sum(topk_vals, axis=-1) / k                            # [B, H]
    return jnp.tanh(pooled @ weight.T + bias)


if __name__ == "__main__":
    B, S, H = 16, 8, 32  # batch, seq, hidden (small test shapes)

    key = jax.random.PRNGKey(0)
    kx, kw, kb = jax.random.split(key, 3)
    hidden_states = jax.random.normal(kx, (B, S, H), dtype=jnp.float32)
    # Deterministic "nn.Linear(H, H)"-shaped params (synthetic init, no checkpoint).
    weight = jax.random.normal(kw, (H, H), dtype=jnp.float32) * 0.05
    bias = jax.random.normal(kb, (H,), dtype=jnp.float32) * 0.05

    out = my_bert_pooler(hidden_states, weight, bias, k=K_TOP, tb=8)  # grid=(2,)
    out = jax.block_until_ready(out)

    ref = _reference(hidden_states, weight, bias, k=K_TOP)
    assert out.shape == (B, H)
    assert jnp.allclose(out, ref, atol=1e-5, rtol=1e-5), "mismatch vs reference"

    print("KERNEL_OK")
</pallas_src>

<mosaic_0001>
module attributes {stable_mosaic.version = 11 : i64} {
  func.func @_pooler_kernel(%arg0: i32, %arg1: memref<8x8x32xf32, #tpu.memory_space<vmem>>, %arg2: memref<32x32xf32, #tpu.memory_space<vmem>>, %arg3: memref<1x32xf32, #tpu.memory_space<vmem>>, %arg4: memref<8x32xf32, #tpu.memory_space<vmem>>) attributes {dimension_semantics = [#tpu.dimension_semantics<parallel>], iteration_bounds = array<i64: 2>, scalar_prefetch = 0 : i64, scratch_operands = 0 : i64, tpu.core_type = #tpu.core_type<tc>, window_params = [{transform_indices = @transform_0, window_bounds = array<i64: 8, 8, 32>}, {pipeline_mode = #tpu.pipeline_mode<synchronous>, transform_indices = @transform_1, window_bounds = array<i64: 32, 32>}, {pipeline_mode = #tpu.pipeline_mode<synchronous>, transform_indices = @transform_2, window_bounds = array<i64: 1, 32>}, {transform_indices = @transform_3, window_bounds = array<i64: 8, 32>}]} {
    %cst = arith.constant 0xFF800000 : f32
    %0 = vector.broadcast %cst : f32 to vector<8x32xf32>
    %c0 = arith.constant 0 : index
    %c0_0 = arith.constant 0 : index
    %c0_1 = arith.constant 0 : index
    %1 = vector.load %arg1[%c0, %c0_0, %c0_1] : memref<8x8x32xf32, #tpu.memory_space<vmem>>, vector<8x1x32xf32>
    %2 = vector.shape_cast %1 : vector<8x1x32xf32> to vector<8x32xf32>
    %3 = arith.maximumf %0, %2 : vector<8x32xf32>
    %4 = arith.minimumf %0, %2 : vector<8x32xf32>
    %5 = arith.maximumf %0, %4 : vector<8x32xf32>
    %c0_2 = arith.constant 0 : index
    %c1 = arith.constant 1 : index
    %c0_3 = arith.constant 0 : index
    %6 = vector.load %arg1[%c0_2, %c1, %c0_3] : memref<8x8x32xf32, #tpu.memory_space<vmem>>, vector<8x1x32xf32>
    %7 = vector.shape_cast %6 : vector<8x1x32xf32> to vector<8x32xf32>
    %8 = arith.maximumf %3, %7 : vector<8x32xf32>
    %9 = arith.minimumf %3, %7 : vector<8x32xf32>
    %10 = arith.maximumf %5, %9 : vector<8x32xf32>
    %c0_4 = arith.constant 0 : index
    %c2 = arith.constant 2 : index
    %c0_5 = arith.constant 0 : index
    %11 = vector.load %arg1[%c0_4, %c2, %c0_5] : memref<8x8x32xf32, #tpu.memory_space<vmem>>, vector<8x1x32xf32>
    %12 = vector.shape_cast %11 : vector<8x1x32xf32> to vector<8x32xf32>
    %13 = arith.maximumf %8, %12 : vector<8x32xf32>
    %14 = arith.minimumf %8, %12 : vector<8x32xf32>
    %15 = arith.maximumf %10, %14 : vector<8x32xf32>
    %c0_6 = arith.constant 0 : index
    %c3 = arith.constant 3 : index
    %c0_7 = arith.constant 0 : index
    %16 = vector.load %arg1[%c0_6, %c3, %c0_7] : memref<8x8x32xf32, #tpu.memory_space<vmem>>, vector<8x1x32xf32>
    %17 = vector.shape_cast %16 : vector<8x1x32xf32> to vector<8x32xf32>
    %18 = arith.maximumf %13, %17 : vector<8x32xf32>
    %19 = arith.minimumf %13, %17 : vector<8x32xf32>
    %20 = arith.maximumf %15, %19 : vector<8x32xf32>
    %c0_8 = arith.constant 0 : index
    %c4 = arith.constant 4 : index
    %c0_9 = arith.constant 0 : index
    %21 = vector.load %arg1[%c0_8, %c4, %c0_9] : memref<8x8x32xf32, #tpu.memory_space<vmem>>, vector<8x1x32xf32>
    %22 = vector.shape_cast %21 : vector<8x1x32xf32> to vector<8x32xf32>
    %23 = arith.maximumf %18, %22 : vector<8x32xf32>
    %24 = arith.minimumf %18, %22 : vector<8x32xf32>
    %25 = arith.maximumf %20, %24 : vector<8x32xf32>
    %c0_10 = arith.constant 0 : index
    %c5 = arith.constant 5 : index
    %c0_11 = arith.constant 0 : index
    %26 = vector.load %arg1[%c0_10, %c5, %c0_11] : memref<8x8x32xf32, #tpu.memory_space<vmem>>, vector<8x1x32xf32>
    %27 = vector.shape_cast %26 : vector<8x1x32xf32> to vector<8x32xf32>
    %28 = arith.maximumf %23, %27 : vector<8x32xf32>
    %29 = arith.minimumf %23, %27 : vector<8x32xf32>
    %30 = arith.maximumf %25, %29 : vector<8x32xf32>
    %c0_12 = arith.constant 0 : index
    %c6 = arith.constant 6 : index
    %c0_13 = arith.constant 0 : index
    %31 = vector.load %arg1[%c0_12, %c6, %c0_13] : memref<8x8x32xf32, #tpu.memory_space<vmem>>, vector<8x1x32xf32>
    %32 = vector.shape_cast %31 : vector<8x1x32xf32> to vector<8x32xf32>
    %33 = arith.maximumf %28, %32 : vector<8x32xf32>
    %34 = arith.minimumf %28, %32 : vector<8x32xf32>
    %35 = arith.maximumf %30, %34 : vector<8x32xf32>
    %c0_14 = arith.constant 0 : index
    %c7 = arith.constant 7 : index
    %c0_15 = arith.constant 0 : index
    %36 = vector.load %arg1[%c0_14, %c7, %c0_15] : memref<8x8x32xf32, #tpu.memory_space<vmem>>, vector<8x1x32xf32>
    %37 = vector.shape_cast %36 : vector<8x1x32xf32> to vector<8x32xf32>
    %38 = arith.maximumf %33, %37 : vector<8x32xf32>
    %39 = arith.minimumf %33, %37 : vector<8x32xf32>
    %40 = arith.maximumf %35, %39 : vector<8x32xf32>
    %41 = arith.addf %38, %40 : vector<8x32xf32>
    %cst_16 = arith.constant 5.000000e-01 : f32
    %42 = vector.broadcast %cst_16 : f32 to vector<8x32xf32>
    %43 = arith.mulf %41, %42 : vector<8x32xf32>
    %c0_17 = arith.constant 0 : index
    %c0_18 = arith.constant 0 : index
    %44 = vector.load %arg2[%c0_17, %c0_18] : memref<32x32xf32, #tpu.memory_space<vmem>>, vector<32x32xf32>
    %cst_19 = arith.constant dense<0.000000e+00> : vector<8x32xf32>
    %45 = tpu.matmul %43, %44, %cst_19 {dimension_numbers = #tpu.dot_dimension_numbers<[1], [1], [0], [0], [0, 0, 1, 0], [], []>} : vector<8x32xf32>, vector<32x32xf32>, vector<8x32xf32> -> vector<8x32xf32>
    %c0_20 = arith.constant 0 : index
    %c0_21 = arith.constant 0 : index
    %46 = vector.load %arg3[%c0_20, %c0_21] : memref<1x32xf32, #tpu.memory_space<vmem>>, vector<1x32xf32>
    %47 = vector.broadcast %46 : vector<1x32xf32> to vector<8x32xf32>
    %48 = arith.addf %45, %47 : vector<8x32xf32>
    %49 = math.tanh %48 : vector<8x32xf32>
    %c0_22 = arith.constant 0 : index
    %c0_23 = arith.constant 0 : index
    %50 = vector.load %arg4[%c0_22, %c0_23] : memref<8x32xf32, #tpu.memory_space<vmem>>, vector<8x32xf32>
    tpu.vector_store %arg4[%c0_22, %c0_23], %49 {strides = array<i32>} : memref<8x32xf32, #tpu.memory_space<vmem>>, vector<8x32xf32>,
    return
  }
  func.func @transform_0(%arg0: i32) -> (i32, i32, i32) {
    %c0_i32 = arith.constant 0 : i32
    %c0_i32_0 = arith.constant 0 : i32
    %c0_i32_1 = arith.constant 0 : i32
    return %arg0, %c0_i32, %c0_i32_0 : i32, i32, i32
  }
  func.func @transform_1(%arg0: i32) -> (i32, i32) {
    %c0_i32 = arith.constant 0 : i32
    %c0_i32_0 = arith.constant 0 : i32
    %c0_i32_1 = arith.constant 0 : i32
    return %c0_i32, %c0_i32_0 : i32, i32
  }
  func.func @transform_2(%arg0: i32) -> (i32, i32) {
    %c0_i32 = arith.constant 0 : i32
    %c0_i32_0 = arith.constant 0 : i32
    %c0_i32_1 = arith.constant 0 : i32
    return %c0_i32, %c0_i32_0 : i32, i32
  }
  func.func @transform_3(%arg0: i32) -> (i32, i32) {
    %c0_i32 = arith.constant 0 : i32
    %c0_i32_0 = arith.constant 0 : i32
    return %arg0, %c0_i32 : i32, i32
  }
}

</mosaic_0001>

<bundles_post_ra>
// kernel: tpu_custom_call.1
= control target key start
LH: loop header
LB: loop body
LE: loop exit
PB: predicated region body
PF: predicated region fallthrough
CT: control target
= control target key end

     0   :  { %8 = vsyncpa [#allocation3], 0  ;;  %s1238_s0 = inlined_call_operand.hbm [shape: f32[16,8,32], index: 0, kind: input, shape index: {}]   ;;  %s1239_s1 = inlined_call_operand.hbm [shape: f32[32,32], index: 1, kind: input, shape index: {}]   ;;  %s1240_s2 = inlined_call_operand.vmem [shape: f32[1,32], index: 2, kind: input, shape index: {}]   ;;  %s1241_s3 = inlined_call_operand.hbm [shape: f32[16,32], index: 3, kind: output, shape index: {}]  }
   0x1   :  { %10 = vsyncpa [#allocation3 + $0x1], 0 }
   0x2   :  { %11 = vsyncpa [#allocation6], 0 }
   0x3   :  { %12 = vsyncpa [#allocation4], 0 }
   0x4   :  { %14 = vsyncpa [#allocation4 + $0x1], 0  ;;  %s950_s12 = smov 0   ;;  %s952_s13 = smov 0  }
   0x5   :  { %s954_s14 = smov 0   ;;  %s956_s15 = smov 0  }
   0x6 LB: > { %s971_s16 = sadd.s32 4294967295, %s920_s15   ;;  %s682_s17 = sadd.s32 4294967294, %s920_s15   ;;  %s920_s15 = sphi %s956_s15, %s1263_s15   ;;  %s916_s14 = sphi %s954_s14, %s1262_s14   ;;  %s912_s13 = sphi %s952_s13, %s1261_s13   ;;  %s908_s12 = sphi %s950_s12, %s1260_s12  }
   0x7   : > { %p40_p0 = scmp.ne.s32.totalorder %s912_s13, %s908_s12  ;;  %p1242_p1 = scmp.eq.s32.totalorder %s971_s16, 0 }
   0x8   : > { %p112_p3 = scmp.eq.s32.totalorder %s682_s17, 1  ;;  %p683_p5 = scmp.ge.s32.totalorder %s920_s15, 1 }
   0x9   : > { %p980_p4 = por %p1242_p1, %p40_p0  ;;  %p119_p7 = scmp.lt.s32.totalorder %s920_s15, 3 }
   0xa   : > { %p985_p6 = por %p112_p3, %p40_p0  ;;  %s922_s21 = smov [#allocation5]  }
   0xb   : > { %s1245_s18 = scalar_select %p980_p4, 1, 0 }
   0xc   : > { %s1246_s19 = scalar_select %p985_p6, 1, 0 }
   0xd   : > { %p990_p8 = pnand %p683_p5, %p119_p7  ;;  %s131_s22 = sshll.u32 %s922_s21, 4  ;;  %s994_s22 = int_to_ptr.vmem [resolvable:$true] %s131_s22 }
   0xe   : > { %s1006_s24 = sadd.s32 1, %s920_s15   ;;  %s27_s25 = sadd.s32 1, %s916_s14 }
   0xf   : > { %s1247_s20 = scalar_select %p990_p8, 1, 0 }
  0x10   : > { %p736_p9 = pneg %p990_p8  ;;  %s24_s26 = ssub.s32 %s920_s15, %s1006_s24 }
  0x11   : > { %s792_s29 = scalar_lea.hbm %s1239_s1, 512 }
  0x12   : > { %p1001_p11 = pnand %p736_p9, %p1242_p1  ;;  %p793_p12 = scmp.ne.s32.totalorder %s1239_s1, %s792_s29 }
  0x13   : > { %p799_p5 = scmp.lt.u32.totalorder %s792_s29, %s1239_s1 }
  0x14   : > { %p794_p13 = pneg %p1001_p11 }
  0x16   : > { %p795_p0 = pnand %p794_p13, %p793_p12 }
  0x18   : > { %p796_p3 = pneg %p795_p0 }
  0x1a   : > { %p801_p7 = pnand %p799_p5, %p796_p3 }
  0x1c   : > { %804 = shalt.err (!%p801_p7)
}
  0x1d   : > { %s805_s7 = scalar_lea.vmem %s994_s22, 512  ;;  %p813_p2 = scmp.lt.s32.totalorder %s994_s22, %s994_s22 }
  0x1e   : > { %p806_p9 = scmp.ne.s32.totalorder %s994_s22, %s805_s7  ;;  %p814_p6 = scmp.lt.s32.totalorder %s805_s7, %s805_s7 }
  0x20   : > { %p808_p10 = pnand %p806_p9, %p794_p13  ;;  %p815_p4 = por %p814_p6, %p813_p2 }
  0x22   : > { %p809_p1 = pneg %p808_p10 }
  0x24   : > { %p816_p8 = pnand %p815_p4, %p809_p1 }
  0x26   : > { %819 = shalt.err (!%p816_p8)
}
  0x27   : > { %s923_s8 = smov 128   ;;  %s924_s9 = smov 8  }
  0x28   : > { %739 = dma.hbm_to_vmem [thread:$0]  (!%p1001_p11), %s1239_s1, 512, %s994_s22, [#allocation6], %s923_s8, %s923_s8, %s924_s9  }
  0x29   : > { %p25_p1 = scmp.eq.s32.totalorder %s24_s26, 0  ;;  %p34_p2 = scmp.ne.s32.totalorder %s916_s14, %s912_s13 }
  0x2a   : > { %p35_p4 = scmp.eq.s32.totalorder %s920_s15, 0  ;;  %p749_p6 = scmp.lt.s32.totalorder %s920_s15, 2 }
  0x2b   : > { %s1040_s17 = scalar_select %p25_p1, %s916_s14, %s27_s25  }
  0x2c   : > { %p36_p8 = por %p35_p4, %p34_p2  ;;  %p1249_p10 = scmp.eq.s32.totalorder %s971_s16, 1 }
  0x2d   : > { %s148_s23 = sand.u32 1, %s916_s14   ;;  %s703_s27 = sshll.u32 %s920_s15, 10 }
  0x2e   : > { %p1044_p12 = por %p1249_p10, %p34_p2  ;;  %s686_s28 = sshll.u32 %s148_s23, 6 }
  0x2f   : > { %s1053_s4 = scalar_lea.hbm %s1238_s0, %s703_s27  ;;  %s152_s22 = scalar_lea.vmem [#allocation2], %s686_s28 }
  0x30   : > { %s159_s25 = sshll.u32 %s152_s22, 4  ;;  %p1055_p11 = pnand %p749_p6, %p36_p8  ;;  %s1059_s25 = int_to_ptr.vmem [resolvable:$true] %s159_s25 }
  0x31   : > { %s1061_s5 = scalar_lea.sflag [#allocation3], %s148_s23  ;;  %s820_s6 = scalar_lea.hbm %s1053_s4, 1024 }
  0x32   : > { %p821_p13 = scmp.ne.s32.totalorder %s1053_s4, %s820_s6  ;;  %p822_p0 = pneg %p1055_p11 }
  0x33   : > { %s825_s11 = scalar_lea.hbm %s1238_s0, 2048  ;;  %p826_p7 = scmp.lt.u32.totalorder %s1053_s4, %s1238_s0 }
  0x34   : > { %p823_p3 = pnand %p822_p0, %p821_p13  ;;  %p827_p9 = scmp.lt.u32.totalorder %s825_s11, %s820_s6 }
  0x35   : > { %p829_p2 = scmp.lt.u32.totalorder %s820_s6, %s1053_s4 }
  0x36   : > { %p824_p5 = pneg %p823_p3  ;;  %p828_p1 = por %p827_p9, %p826_p7 }
  0x38   : > { %p830_p4 = por %p829_p2, %p828_p1 }
  0x3a   : > { %p831_p6 = pnand %p830_p4, %p824_p5 }
  0x3c   : > { %834 = shalt.err (!%p831_p6)
}
  0x3d   : > { %s835_s23 = scalar_lea.vmem %s1059_s25, 1024  ;;  %s925_s29 = smov [#allocation2]  }
  0x3e   : > { %p836_p8 = scmp.ne.s32.totalorder %s1059_s25, %s835_s23  ;;  %s840_s30 = sshll.u32 %s925_s29, 4  ;;  %s841_s30 = int_to_ptr.vmem [resolvable:$false] %s840_s30 }
  0x3f   : > { %s842_s22 = scalar_lea.vmem %s841_s30, 2048  ;;  %p843_p3 = scmp.lt.s32.totalorder %s1059_s25, %s841_s30 }
  0x40   : > { %p838_p10 = pnand %p836_p8, %p822_p0  ;;  %p844_p7 = scmp.lt.s32.totalorder %s842_s22, %s835_s23 }
  0x42   : > { %p839_p13 = pneg %p838_p10  ;;  %p845_p9 = por %p844_p7, %p843_p3 }
  0x44   : > { %p846_p1 = pnand %p845_p9, %p839_p13 }
  0x46   : > { %849 = shalt.err (!%p846_p1)
}
  0x47   : > { %743 = dma.hbm_to_vmem [thread:$0]  (!%p1055_p11), %s1053_s4, 1024, %s1059_s25, %s1061_s5, %s923_s8, %s923_s8, %s924_s9  }
  0x48   : > { %p1252_p0 = scmp.ne.s32.totalorder %s1247_s20, 0 }
  0x49   : > { %s1095_s6 = sand.u32 (!%p1252_p0), 1, %s912_s13   ;;  %p1253_p5 = scmp.ne.s32.totalorder (!%p1252_p0), %s1245_s18, 0 }
  0x4a   : > { %171 = sbr.rel (%p1252_p0) target bundleno = 386 (0x182), region = 32  ;;  %s690_s7 = sshll.u32 (!%p1252_p0), %s1095_s6, 6 }
  0x4b   : > { %s174_s10 = scalar_lea.sflag (!%p1252_p0), [#allocation3], %s1095_s6  ;;  %s1099_s11 = scalar_lea.vmem (!%p1252_p0), [#allocation2], %s690_s7 }
  0x51   : > { %895 = dma.done.wait (%p1253_p5), %s174_s10, 1024  }
  0x52   : > { %897 = vsyncadd (%p1253_p5), %s174_s10, 4294966272  ;;  %p1254_p11 = scmp.eq.s32.totalorder %s971_s16, 0 }
  0x54   : > { %899 = dma.done.wait (%p1254_p11), [#allocation6], 512   ;;  %p1255_p2 = pmov %p1254_p11 }
  0x55   : > { %v926_v0 = vmov 0.0|0.0   ;;  %vm927_vm0 = vmmov 0   ;;  %v928_v1 = vmov 0.0   ;;  %vm501_vm1 = vcmask 261120   ;;  %v461_v3 = vld [vmem:[#allocation5] sm:$0xff]  ;;  %v462_v4 = vld [vmem:[#allocation5 + $0x8] sm:$0xff] }
  0x56   : > { %901 = vsyncadd (%p1255_p2), [#allocation6], 4294966784  ;;  %720 = vmatprep.subr.bf16.mxu0 %v926_v0  ;;  %717 = vmatprep.mubr.msk.f32.mxu0 %vm927_vm0, %v928_v1  ;;  %v463_v5 = vld [vmem:[#allocation5 + $0x10] sm:$0xff]  ;;  %v721_v6 = vpack.c.bf16 %v462_v4, %v461_v3  ;;  %v464_v7 = vld [vmem:[#allocation5 + $0x18] sm:$0xff]  ;;  %vm481_vm3 = vcmask 1041409   ;;  %vm484_vm4 = vcmask 1042434  }
  0x57   : > { %vm1111_vm2 = vmpackc.low %vm501_vm1, %vm501_vm1  ;;  %v205_v8 = vld [vmem:[%s1099_s11] sm:$0x1]  ;;  %v206_v9 = vld [vmem:[%s1099_s11 + $0x8] sm:$0x1]  ;;  %v725_v13 = vpack.c.bf16 %v464_v7, %v463_v5  ;;  %vm487_vm5 = vcmask 1043459   ;;  %vm490_vm6 = vcmask 1044484  }
  0x58   : > { %v207_v10 = vld [vmem:[%s1099_s11 + $0x10] sm:$0x1]  ;;  %v208_v11 = vld [vmem:[%s1099_s11 + $0x18] sm:$0x1]  ;;  %v209_v12 = vld [vmem:[%s1099_s11 + $0x20] sm:$0x1]  ;;  %723 = vmatpush3.bf16.xpose.msk.msra.mxu0 %vm1111_vm2, %v721_v6 }
  0x59   : > { %v210_v14 = vld [vmem:[%s1099_s11 + $0x28] sm:$0x1]  ;;  %v211_v15 = vld [vmem:[%s1099_s11 + $0x30] sm:$0x1]  ;;  %v212_v16 = vld [vmem:[%s1099_s11 + $0x38] sm:$0x1]  ;;  %724 = vmatprep.subr.bf16.mxu0 %v926_v0 }
  0x5a   : > { %v213_v17 = vmin.f32 %v205_v8, -inf  ;;  %v214_v18 = vmin.f32 %v206_v9, -inf  ;;  %v215_v19 = vmin.f32 %v207_v10, -inf  ;;  %v216_v20 = vmin.f32 %v208_v11, -inf  ;;  %v221_v21 = vld [vmem:[%s1099_s11 + $0x1] sm:$0x1] }
  0x5b   : > { %v217_v22 = vmin.f32 %v209_v12, -inf  ;;  %v218_v23 = vmin.f32 %v210_v14, -inf  ;;  %v219_v24 = vmin.f32 %v211_v15, -inf  ;;  %v220_v25 = vmin.f32 %v212_v16, -inf  ;;  %v222_v26 = vld [vmem:[%s1099_s11 + $0x9] sm:$0x1] }
  0x5c   : > { %v223_v27 = vld [vmem:[%s1099_s11 + $0x11] sm:$0x1]  ;;  %v224_v28 = vld [vmem:[%s1099_s11 + $0x19] sm:$0x1]  ;;  %v225_v29 = vld [vmem:[%s1099_s11 + $0x21] sm:$0x1]  ;;  %v229_v30 = vmax.f32 %v205_v8, %v221_v21  ;;  %v230_v31 = vmax.f32 %v206_v9, %v222_v26  ;;  %v237_v32 = vmin.f32 %v205_v8, %v221_v21  ;;  %v238_v33 = vmin.f32 %v206_v9, %v222_v26 }
  0x5d   : > { %v226_v34 = vld [vmem:[%s1099_s11 + $0x29] sm:$0x1]  ;;  %v227_v35 = vld [vmem:[%s1099_s11 + $0x31] sm:$0x1]  ;;  %v228_v36 = vld [vmem:[%s1099_s11 + $0x39] sm:$0x1]  ;;  %v231_v37 = vmax.f32 %v207_v10, %v223_v27  ;;  %v232_v38 = vmax.f32 %v208_v11, %v224_v28  ;;  %v233_v39 = vmax.f32 %v209_v12, %v225_v29  ;;  %v239_v40 = vmin.f32 %v207_v10, %v223_v27 }
  0x5e   : > { %v234_v41 = vmax.f32 %v210_v14, %v226_v34  ;;  %v235_v42 = vmax.f32 %v211_v15, %v227_v35  ;;  %v236_v43 = vmax.f32 %v212_v16, %v228_v36  ;;  %v240_v44 = vmin.f32 %v208_v11, %v224_v28  ;;  %v253_v45 = vld [vmem:[%s1099_s11 + $0x2] sm:$0x1]  ;;  %v254_v46 = vld [vmem:[%s1099_s11 + $0xa] sm:$0x1]  ;;  %v255_v51 = vld [vmem:[%s1099_s11 + $0x12] sm:$0x1] }
  0x5f   : > { %v241_v47 = vmin.f32 %v209_v12, %v225_v29  ;;  %v242_v48 = vmin.f32 %v210_v14, %v226_v34  ;;  %v243_v49 = vmin.f32 %v211_v15, %v227_v35  ;;  %v244_v50 = vmin.f32 %v212_v16, %v228_v36  ;;  %v256_v52 = vld [vmem:[%s1099_s11 + $0x1a] sm:$0x1]  ;;  %v257_v53 = vld [vmem:[%s1099_s11 + $0x22] sm:$0x1]  ;;  %v258_v58 = vld [vmem:[%s1099_s11 + $0x2a] sm:$0x1] }
  0x60   : > { %v245_v54 = vmax.f32 %v213_v17, %v237_v32  ;;  %v246_v55 = vmax.f32 %v214_v18, %v238_v33  ;;  %v247_v56 = vmax.f32 %v215_v19, %v239_v40  ;;  %v248_v57 = vmax.f32 %v216_v20, %v240_v44  ;;  %v259_v59 = vld [vmem:[%s1099_s11 + $0x32] sm:$0x1]  ;;  %v260_v60 = vld [vmem:[%s1099_s11 + $0x3a] sm:$0x1]  ;;  %727 = vmatpush3.bf16.xpose.msk.msra.mxu0 %vm1111_vm2, %v725_v13  ;;  %v285_v13 = vld [vmem:[%s1099_s11 + $0x3] sm:$0x1] }
  0x61   : > { %v249_v61 = vmax.f32 %v217_v22, %v241_v47  ;;  %v250_v62 = vmax.f32 %v218_v23, %v242_v48  ;;  %v251_v63 = vmax.f32 %v219_v24, %v243_v49  ;;  %v252_v0 = vmax.f32 %v220_v25, %v244_v50  ;;  %v286_v14 = vld [vmem:[%s1099_s11 + $0xb] sm:$0x1]  ;;  %v287_v19 = vld [vmem:[%s1099_s11 + $0x13] sm:$0x1]  ;;  %v288_v20 = vld [vmem:[%s1099_s11 + $0x1b] sm:$0x1] }
  0x62   : > { %v261_v1 = vmax.f32 %v229_v30, %v253_v45  ;;  %v262_v3 = vmax.f32 %v230_v31, %v254_v46  ;;  %v263_v4 = vmax.f32 %v231_v37, %v255_v51  ;;  %v264_v5 = vmax.f32 %v232_v38, %v256_v52  ;;  %v289_v21 = vld [vmem:[%s1099_s11 + $0x23] sm:$0x1]  ;;  %v290_v26 = vld [vmem:[%s1099_s11 + $0x2b] sm:$0x1]  ;;  %v291_v27 = vld [vmem:[%s1099_s11 + $0x33] sm:$0x1] }
  0x63   : > { %v265_v6 = vmax.f32 %v233_v39, %v257_v53  ;;  %v266_v7 = vmax.f32 %v234_v41, %v258_v58  ;;  %v267_v8 = vmax.f32 %v235_v42, %v259_v59  ;;  %v268_v9 = vmax.f32 %v236_v43, %v260_v60  ;;  %v292_v28 = vld [vmem:[%s1099_s11 + $0x3b] sm:$0x1]  ;;  %s692_s8 = sshll.u32 %s1095_s6, 3  ;;  %s700_s9 = sshll.u32 %s971_s16, 7 }
  0x64   : > { %v269_v10 = vmin.f32 %v229_v30, %v253_v45  ;;  %v270_v2 = vmin.f32 %v230_v31, %v254_v46  ;;  %v271_v11 = vmin.f32 %v231_v37, %v255_v51  ;;  %v272_v12 = vmin.f32 %v232_v38, %v256_v52  ;;  %v317_v45 = vld [vmem:[%s1099_s11 + $0x4] sm:$0x1]  ;;  %v318_v46 = vld [vmem:[%s1099_s11 + $0xc] sm:$0x1]  ;;  %v319_v51 = vld [vmem:[%s1099_s11 + $0x14] sm:$0x1]  ;;  %s1193_s27 = scalar_lea.hbm %s1241_s3, %s700_s9 }
  0x65   : > { %v273_v15 = vmin.f32 %v233_v39, %v257_v53  ;;  %v274_v16 = vmin.f32 %v234_v41, %v258_v58  ;;  %v275_v17 = vmin.f32 %v235_v42, %v259_v59  ;;  %v276_v18 = vmin.f32 %v236_v43, %v260_v60  ;;  %v320_v52 = vld [vmem:[%s1099_s11 + $0x1c] sm:$0x1]  ;;  %v321_v53 = vld [vmem:[%s1099_s11 + $0x24] sm:$0x1]  ;;  %v322_v58 = vld [vmem:[%s1099_s11 + $0x2c] sm:$0x1] }
  0x66   : > { %v277_v22 = vmax.f32 %v245_v54, %v269_v10  ;;  %v278_v23 = vmax.f32 %v246_v55, %v270_v2  ;;  %v279_v24 = vmax.f32 %v247_v56, %v271_v11  ;;  %v280_v25 = vmax.f32 %v248_v57, %v272_v12  ;;  %v323_v59 = vld [vmem:[%s1099_s11 + $0x34] sm:$0x1]  ;;  %v324_v60 = vld [vmem:[%s1099_s11 + $0x3c] sm:$0x1]  ;;  %s203_s4 = scalar_lea.vmem [#allocation7], %s692_s8  ;;  %s589_s28 = scalar_lea.sflag [#allocation4], %s1095_s6 }
  0x67   : > { %v281_v29 = vmax.f32 %v249_v61, %v273_v15  ;;  %v282_v30 = vmax.f32 %v250_v62, %v274_v16  ;;  %v283_v31 = vmax.f32 %v251_v63, %v275_v17  ;;  %v284_v32 = vmax.f32 %v252_v0, %v276_v18  ;;  %s602_s25 = sshll.u32 %s203_s4, 4  ;;  %s929_s16 = smov [#allocation7]   ;;  %s1195_s25 = int_to_ptr.vmem [resolvable:$true] %s602_s25 }
  0x68   : > { %v293_v33 = vmax.f32 %v261_v1, %v285_v13  ;;  %v294_v34 = vmax.f32 %v262_v3, %v286_v14  ;;  %v295_v35 = vmax.f32 %v263_v4, %v287_v19  ;;  %v296_v36 = vmax.f32 %v264_v5, %v288_v20  ;;  %s850_s23 = scalar_lea.vmem %s1195_s25, 128  ;;  %s854_s29 = sshll.u32 %s929_s16, 4  ;;  %s855_s29 = int_to_ptr.vmem [resolvable:$false] %s854_s29 }
  0x69   : > { %v297_v37 = vmax.f32 %v265_v6, %v289_v21  ;;  %v298_v38 = vmax.f32 %v266_v7, %v290_v26  ;;  %v299_v39 = vmax.f32 %v267_v8, %v291_v27  ;;  %v300_v40 = vmax.f32 %v268_v9, %v292_v28  ;;  %p851_p4 = scmp.ne.s32.totalorder %s1195_s25, %s850_s23  ;;  %s856_s30 = scalar_lea.vmem %s855_s29, 256 }
  0x6a   : > { %v301_v41 = vmin.f32 %v261_v1, %v285_v13  ;;  %v302_v42 = vmin.f32 %v262_v3, %v286_v14  ;;  %v303_v43 = vmin.f32 %v263_v4, %v287_v19  ;;  %v304_v44 = vmin.f32 %v264_v5, %v288_v20  ;;  %v349_v13 = vld [vmem:[%s1099_s11 + $0x5] sm:$0x1]  ;;  %v350_v14 = vld [vmem:[%s1099_s11 + $0xd] sm:$0x1]  ;;  %v351_v19 = vld [vmem:[%s1099_s11 + $0x15] sm:$0x1]  ;;  %p857_p10 = scmp.lt.s32.totalorder %s1195_s25, %s855_s29  ;;  %p858_p13 = scmp.lt.s32.totalorder %s856_s30, %s850_s23 }
  0x6b   : > { %v305_v47 = vmin.f32 %v265_v6, %v289_v21  ;;  %v306_v48 = vmin.f32 %v266_v7, %v290_v26  ;;  %v307_v49 = vmin.f32 %v267_v8, %v291_v27  ;;  %v308_v50 = vmin.f32 %v268_v9, %v292_v28  ;;  %v352_v20 = vld [vmem:[%s1099_s11 + $0x1d] sm:$0x1]  ;;  %v353_v21 = vld [vmem:[%s1099_s11 + $0x25] sm:$0x1]  ;;  %v354_v26 = vld [vmem:[%s1099_s11 + $0x2d] sm:$0x1]  ;;  %p852_p6 = pnand %p851_p4, %p1044_p12 }
  0x6c   : > { %v309_v54 = vmax.f32 %v277_v22, %v301_v41  ;;  %v310_v55 = vmax.f32 %v278_v23, %v302_v42  ;;  %v311_v56 = vmax.f32 %v279_v24, %v303_v43  ;;  %v312_v57 = vmax.f32 %v280_v25, %v304_v44  ;;  %v355_v27 = vld [vmem:[%s1099_s11 + $0x35] sm:$0x1]  ;;  %v356_v28 = vld [vmem:[%s1099_s11 + $0x3d] sm:$0x1]  ;;  %p859_p3 = por %p858_p13, %p857_p10 }
  0x6d   : > { %v313_v61 = vmax.f32 %v281_v29, %v305_v47  ;;  %v314_v62 = vmax.f32 %v282_v30, %v306_v48  ;;  %v315_v63 = vmax.f32 %v283_v31, %v307_v49  ;;  %v316_v0 = vmax.f32 %v284_v32, %v308_v50  ;;  %p853_p8 = pneg %p852_p6 }
  0x6e   : > { %v325_v1 = vmax.f32 %v293_v33, %v317_v45  ;;  %v326_v3 = vmax.f32 %v294_v34, %v318_v46  ;;  %v327_v4 = vmax.f32 %v295_v35, %v319_v51  ;;  %v328_v5 = vmax.f32 %v296_v36, %v320_v52 }
  0x6f   : > { %v329_v6 = vmax.f32 %v297_v37, %v321_v53  ;;  %v330_v7 = vmax.f32 %v298_v38, %v322_v58  ;;  %v331_v8 = vmax.f32 %v299_v39, %v323_v59  ;;  %v332_v9 = vmax.f32 %v300_v40, %v324_v60  ;;  %p860_p7 = pnand %p859_p3, %p853_p8 }
  0x70   : > { %v333_v10 = vmin.f32 %v293_v33, %v317_v45  ;;  %v334_v2 = vmin.f32 %v294_v34, %v318_v46  ;;  %v335_v11 = vmin.f32 %v295_v35, %v319_v51  ;;  %v336_v12 = vmin.f32 %v296_v36, %v320_v52  ;;  %v381_v45 = vld [vmem:[%s1099_s11 + $0x6] sm:$0x1]  ;;  %v382_v46 = vld [vmem:[%s1099_s11 + $0xe] sm:$0x1]  ;;  %v383_v51 = vld [vmem:[%s1099_s11 + $0x16] sm:$0x1] }
  0x71   : > { %v337_v15 = vmin.f32 %v297_v37, %v321_v53  ;;  %v338_v16 = vmin.f32 %v298_v38, %v322_v58  ;;  %v339_v17 = vmin.f32 %v299_v39, %v323_v59  ;;  %v340_v18 = vmin.f32 %v300_v40, %v324_v60  ;;  %v384_v52 = vld [vmem:[%s1099_s11 + $0x1e] sm:$0x1]  ;;  %v385_v53 = vld [vmem:[%s1099_s11 + $0x26] sm:$0x1]  ;;  %v386_v58 = vld [vmem:[%s1099_s11 + $0x2e] sm:$0x1] }
  0x72   : > { %v341_v22 = vmax.f32 %v309_v54, %v333_v10  ;;  %v342_v23 = vmax.f32 %v310_v55, %v334_v2  ;;  %v343_v24 = vmax.f32 %v311_v56, %v335_v11  ;;  %v344_v25 = vmax.f32 %v312_v57, %v336_v12  ;;  %v387_v59 = vld [vmem:[%s1099_s11 + $0x36] sm:$0x1]  ;;  %v388_v60 = vld [vmem:[%s1099_s11 + $0x3e] sm:$0x1] }
  0x73   : > { %v345_v29 = vmax.f32 %v313_v61, %v337_v15  ;;  %v346_v30 = vmax.f32 %v314_v62, %v338_v16  ;;  %v347_v31 = vmax.f32 %v315_v63, %v339_v17  ;;  %v348_v32 = vmax.f32 %v316_v0, %v340_v18 }
  0x74   : > { %v357_v33 = vmax.f32 %v325_v1, %v349_v13  ;;  %v358_v34 = vmax.f32 %v326_v3, %v350_v14  ;;  %v359_v35 = vmax.f32 %v327_v4, %v351_v19  ;;  %v360_v36 = vmax.f32 %v328_v5, %v352_v20 }
  0x75   : > { %v361_v37 = vmax.f32 %v329_v6, %v353_v21  ;;  %v362_v38 = vmax.f32 %v330_v7, %v354_v26  ;;  %v363_v39 = vmax.f32 %v331_v8, %v355_v27  ;;  %v364_v40 = vmax.f32 %v332_v9, %v356_v28 }
  0x76   : > { %v365_v41 = vmin.f32 %v325_v1, %v349_v13  ;;  %v366_v42 = vmin.f32 %v326_v3, %v350_v14  ;;  %v367_v43 = vmin.f32 %v327_v4, %v351_v19  ;;  %v368_v44 = vmin.f32 %v328_v5, %v352_v20 }
  0x77   : > { %v369_v47 = vmin.f32 %v329_v6, %v353_v21  ;;  %v370_v48 = vmin.f32 %v330_v7, %v354_v26  ;;  %v371_v49 = vmin.f32 %v331_v8, %v355_v27  ;;  %v372_v50 = vmin.f32 %v332_v9, %v356_v28  ;;  %v413_v21 = vld [vmem:[%s1099_s11 + $0x7] sm:$0x1]  ;;  %v415_v27 = vld [vmem:[%s1099_s11 + $0x17] sm:$0x1]  ;;  %v416_v28 = vld [vmem:[%s1099_s11 + $0x1f] sm:$0x1] }
  0x78   : > { %v373_v54 = vmax.f32 %v341_v22, %v365_v41  ;;  %v374_v55 = vmax.f32 %v342_v23, %v366_v42  ;;  %v375_v56 = vmax.f32 %v343_v24, %v367_v43  ;;  %v376_v57 = vmax.f32 %v344_v25, %v368_v44  ;;  %v414_v22 = vld [vmem:[%s1099_s11 + $0xf] sm:$0x1] }
  0x79   : > { %v377_v61 = vmax.f32 %v345_v29, %v369_v47  ;;  %v378_v62 = vmax.f32 %v346_v30, %v370_v48  ;;  %v379_v63 = vmax.f32 %v347_v31, %v371_v49  ;;  %v380_v0 = vmax.f32 %v348_v32, %v372_v50  ;;  %v417_v29 = vld [vmem:[%s1099_s11 + $0x27] sm:$0x1]  ;;  %v418_v30 = vld [vmem:[%s1099_s11 + $0x2f] sm:$0x1]  ;;  %v419_v31 = vld [vmem:[%s1099_s11 + $0x37] sm:$0x1] }
  0x7a   : > { %v389_v1 = vmax.f32 %v357_v33, %v381_v45  ;;  %v390_v3 = vmax.f32 %v358_v34, %v382_v46  ;;  %v391_v4 = vmax.f32 %v359_v35, %v383_v51  ;;  %v392_v5 = vmax.f32 %v360_v36, %v384_v52  ;;  %v420_v32 = vld [vmem:[%s1099_s11 + $0x3f] sm:$0x1] }
  0x7b   : > { %v393_v6 = vmax.f32 %v361_v37, %v385_v53  ;;  %v394_v7 = vmax.f32 %v362_v38, %v386_v58  ;;  %v395_v8 = vmax.f32 %v363_v39, %v387_v59  ;;  %v396_v9 = vmax.f32 %v364_v40, %v388_v60 }
  0x7c   : > { %v397_v10 = vmin.f32 %v357_v33, %v381_v45  ;;  %v398_v2 = vmin.f32 %v358_v34, %v382_v46  ;;  %v399_v11 = vmin.f32 %v359_v35, %v383_v51  ;;  %v400_v12 = vmin.f32 %v360_v36, %v384_v52 }
  0x7d   : > { %v401_v13 = vmin.f32 %v361_v37, %v385_v53  ;;  %v402_v14 = vmin.f32 %v362_v38, %v386_v58  ;;  %v403_v15 = vmin.f32 %v363_v39, %v387_v59  ;;  %v404_v16 = vmin.f32 %v364_v40, %v388_v60 }
  0x7e   : > { %v405_v17 = vmax.f32 %v373_v54, %v397_v10  ;;  %v406_v18 = vmax.f32 %v374_v55, %v398_v2  ;;  %v407_v19 = vmax.f32 %v375_v56, %v399_v11  ;;  %v408_v20 = vmax.f32 %v376_v57, %v400_v12 }
  0x7f   : > { %v409_v23 = vmax.f32 %v377_v61, %v401_v13  ;;  %v410_v24 = vmax.f32 %v378_v62, %v402_v14  ;;  %v411_v25 = vmax.f32 %v379_v63, %v403_v15  ;;  %v412_v26 = vmax.f32 %v380_v0, %v404_v16 }
  0x80   : > { %v421_v33 = vmax.f32 %v389_v1, %v413_v21  ;;  %v422_v34 = vmax.f32 %v390_v3, %v414_v22  ;;  %v423_v35 = vmax.f32 %v391_v4, %v415_v27  ;;  %v424_v36 = vmax.f32 %v392_v5, %v416_v28 }
  0x81   : > { %v425_v37 = vmax.f32 %v393_v6, %v417_v29  ;;  %v426_v38 = vmax.f32 %v394_v7, %v418_v30  ;;  %v427_v39 = vmax.f32 %v395_v8, %v419_v31  ;;  %v428_v40 = vmax.f32 %v396_v9, %v420_v32 }
  0x82   : > { %v429_v41 = vmin.f32 %v389_v1, %v413_v21  ;;  %v430_v42 = vmin.f32 %v390_v3, %v414_v22  ;;  %v431_v43 = vmin.f32 %v391_v4, %v415_v27  ;;  %v432_v44 = vmin.f32 %v392_v5, %v416_v28 }
  0x83   : > { %v433_v45 = vmin.f32 %v393_v6, %v417_v29  ;;  %v434_v46 = vmin.f32 %v394_v7, %v418_v30  ;;  %v435_v47 = vmin.f32 %v395_v8, %v419_v31  ;;  %v436_v48 = vmin.f32 %v396_v9, %v420_v32 }
  0x84   : > { %v437_v49 = vmax.f32 %v405_v17, %v429_v41  ;;  %v438_v50 = vmax.f32 %v406_v18, %v430_v42  ;;  %v439_v51 = vmax.f32 %v407_v19, %v431_v43  ;;  %v440_v52 = vmax.f32 %v408_v20, %v432_v44 }
  0x85   : > { %v441_v53 = vmax.f32 %v409_v23, %v433_v45  ;;  %v442_v54 = vmax.f32 %v410_v24, %v434_v46  ;;  %v443_v55 = vmax.f32 %v411_v25, %v435_v47  ;;  %v444_v56 = vmax.f32 %v412_v26, %v436_v48  ;;  %v693_v23 = vld [vmem:[%s1240_s2] ss:$0 sm:$0xff] }
  0x86   : > { %v445_v57 = vadd.f32 %v437_v49, %v421_v33  ;;  %v446_v58 = vadd.f32 %v438_v50, %v422_v34  ;;  %v447_v59 = vadd.f32 %v439_v51, %v423_v35  ;;  %v448_v60 = vadd.f32 %v440_v52, %v424_v36 }
  0x87   : > { %v449_v61 = vadd.f32 %v441_v53, %v425_v37  ;;  %v450_v62 = vadd.f32 %v442_v54, %v426_v38  ;;  %v451_v63 = vadd.f32 %v443_v55, %v427_v39  ;;  %v452_v0 = vadd.f32 %v444_v56, %v428_v40 }
  0x88   : > { %v453_v1 = vmul.f32 0.5, %v445_v57  ;;  %v454_v3 = vmul.f32 0.5, %v446_v58  ;;  %v455_v4 = vmul.f32 0.5, %v447_v59  ;;  %v456_v5 = vmul.f32 0.5, %v448_v60 }
  0x89   : > { %v457_v6 = vmul.f32 0.5, %v449_v61  ;;  %v458_v7 = vmul.f32 0.5, %v450_v62  ;;  %v459_v8 = vmul.f32 0.5, %v451_v63  ;;  %v460_v9 = vmul.f32 0.5, %v452_v0 }
  0x8a   : > { %v480_v10 = vrot.slane %v454_v3, 7  ;;  %v483_v2 = vrot.slane %v455_v4, 6  ;;  %v486_v11 = vrot.slane %v456_v5, 5  ;;  %vm493_vm7 = vcmask 1045509  }
  0x8b   : > { %v489_v12 = vrot.slane %v457_v6, 4  ;;  %v492_v14 = vrot.slane %v458_v7, 3  ;;  %v495_v16 = vrot.slane %v459_v8, 2  ;;  %vm496_vm8 = vcmask 1046534  }
  0x8c   : > { %v482_v13 = vsel %vm481_vm3, %v480_v10, %v453_v1  ;;  %v498_v18 = vrot.slane %v460_v9, 1  ;;  %vm499_vm9 = vcmask 1047559  }
  0x8d   : > { %v485_v15 = vsel %vm484_vm4, %v483_v2, %v482_v13 }
  0x8e   : > { %v488_v17 = vsel %vm487_vm5, %v486_v11, %v485_v15 }
  0x8f   : > { %v491_v19 = vsel %vm490_vm6, %v489_v12, %v488_v17 }
  0x90   : > { %v494_v20 = vsel %vm493_vm7, %v492_v14, %v491_v19 }
  0x91   : > { %v497_v21 = vsel %vm496_vm8, %v495_v16, %v494_v20 }
  0x92   : > { %v500_v22 = vsel %vm499_vm9, %v498_v18, %v497_v21 }
  0x93   : > { %718 = vmatmul.mubr.msk.f32.vlgmr.msra.gmra.mrb[0].mxu0 %vm501_vm1, %v500_v22 }
 0x166   : > { %v582_v24 = vpop.f32.mrb[0].mxu0 }
 0x167   : > { %v583_v25 = vadd.f32 %v693_v23, %v582_v24  ;;  %v719_v26 = vpop.f32.mrb[1].mxu0 }
 0x169   : > { %790 = vtanh.f32 %v583_v25 }
 0x173   : > { %v791_v27 = vpop.eup %790 }
 0x174   : > { %587 = vst.msk [vmem:[%s203_s4] sm:$0xff] %vm501_vm1, %v791_v27 }
 0x175   : > { %863 = shalt.err (!%p860_p7)
}
 0x176   : > { %s864_s22 = scalar_lea.hbm %s1193_s27, 128  ;;  %s868_s10 = scalar_lea.hbm %s1241_s3, 256 }
 0x177   : > { %p865_p9 = scmp.ne.s32.totalorder %s1193_s27, %s864_s22  ;;  %p869_p5 = scmp.lt.u32.totalorder %s1193_s27, %s1241_s3 }
 0x178   : > { %p870_p11 = scmp.lt.u32.totalorder %s868_s10, %s864_s22  ;;  %p872_p4 = scmp.lt.u32.totalorder %s864_s22, %s1193_s27 }
 0x179   : > { %p866_p1 = pnand %p865_p9, %p1044_p12 }
 0x17a   : > { %p871_p2 = por %p870_p11, %p869_p5 }
 0x17b   : > { %p867_p0 = pneg %p866_p1 }
 0x17c   : > { %p873_p6 = por %p872_p4, %p871_p2 }
 0x17e   : > { %p874_p8 = pnand %p873_p6, %p867_p0 }
 0x180   : > { %877 = shalt.err (!%p874_p8)
}
 0x181   : > { %734 = dma.vmem_to_hbm [thread:$0]  (%p1044_p12), %s1195_s25, 128, %s1193_s27, %s589_s28  }
 0x182 PF: > { %s614_s20 = sand.u32 1, %s908_s12   ;;  %p1258_p10 = scmp.ne.s32.totalorder %s1246_s19, 0 }
 0x183   : > { %p1259_p13 = scmp.ge.s32.totalorder %s920_s15, 2  ;;  %s615_s8 = scalar_lea.sflag [#allocation4], %s614_s20 }
 0x185   : > { %p745_p3 = pnand %p1259_p13, %p1258_p10 }
 0x187   : > { %903 = dma.done.wait (!%p745_p3), %s615_s8, 128  }
 0x188   : > { %905 = vsyncadd (!%p745_p3), %s615_s8, 4294967168  ;;  %p17_p7 = scmp.ge.s32.totalorder %s1006_s24, 4   ;;  %s1260_s12 = smov %s912_s13 }
 0x189   : > { %s1261_s13 = smov %s916_s14  ;;  %s1262_s14 = smov %s1040_s17 }
 0x18a   : > { %s1263_s15 = smov %s1006_s24  ;;  %19 = sbr.rel (!%p17_p7) target bundleno = 6 (0x6), region = 81 }
 0x191   :  { %620 = vsyncpa [#allocation3], 1 }
 0x192   :  { %622 = vsyncpa [#allocation3 + $0x1], 1 }
 0x193   :  { %623 = vsyncpa [#allocation6], 1 }
 0x194   :  { %624 = vsyncpa [#allocation4], 1 }
 0x195   :  { %626 = vsyncpa [#allocation4 + $0x1], 1 }

</bundles_post_ra>
